<compile_context>
chip_gen: v5e
topology: v5e:2x2
jax: 0.10.0
libtpu: 0.0.40
codegen_flags: <defaults>
</compile_context>

<pallas_src>
import jax
import jax.numpy as jnp
from jax.experimental import pallas as pl
from jax.experimental.pallas import tpu as pltpu

IN_DIM = 50
HID_DIM = 50
OUT_DIM = 2
FEAT_PAD = 128   # lane-aligned storage width for the 50-wide feature/hidden dims
TB_MAX = 1024    # max batch-tile rows (bf16 tile = 256 KB; fine double-buffered on v5e)


def _round_up(n, m):
    return ((n + m - 1) // m) * m


def _dann_mlp_kernel(x_ref, w1_ref, b1_ref, w2_ref, b2_ref, o_ref):
    # x_ref:  (TB, 128)  bf16     w1_ref: (128, 128) bf16   b1_ref: (1, 128) f32
    # w2_ref: (128, 2)   bf16     b2_ref: (1, 2)     f32    o_ref:  (TB, 2)  f32
    x = x_ref[...]

    # fc1 + bias + ReLU (MXU matmul with f32 accumulation; VPU work stays f32)
    h = jnp.dot(x, w1_ref[...], preferred_element_type=jnp.float32)
    h = h + b1_ref[...]               # broadcast (1, 128) over batch rows
    h = jnp.maximum(h, 0.0)           # ReLU

    # fc2 + bias
    h = h.astype(w2_ref.dtype)        # back to bf16 for the second MXU matmul
    y = jnp.dot(h, w2_ref[...], preferred_element_type=jnp.float32)
    y = y + b2_ref[...]               # broadcast (1, 2)

    o_ref[...] = y.astype(o_ref.dtype)


def domain_classifier_dann_home(x, w1, b1, w2, b2, *, compute_dtype=jnp.bfloat16):
    """x: (B, 50) f32; w1: (50, 50); b1: (50,); w2: (50, 2); b2: (2,)  ->  (B, 2) f32."""
    B, in_dim = x.shape
    assert in_dim == IN_DIM

    # --- batch tiling: pad B up to a multiple of the tile size -----------------
    b_pad = _round_up(B, 8)
    tb = min(TB_MAX, b_pad)
    b_pad = _round_up(b_pad, tb)
    n_tiles = b_pad // tb

    # --- lane-pad the 50-wide dims to 128 and cast the heavy operands to bf16 --
    x_p = jnp.pad(x, ((0, b_pad - B), (0, FEAT_PAD - IN_DIM))).astype(compute_dtype)
    w1_p = jnp.pad(w1, ((0, FEAT_PAD - IN_DIM), (0, FEAT_PAD - HID_DIM))).astype(compute_dtype)
    b1_p = jnp.pad(b1.reshape(1, HID_DIM).astype(jnp.float32),
                   ((0, 0), (0, FEAT_PAD - HID_DIM)))
    w2_p = jnp.pad(w2, ((0, FEAT_PAD - HID_DIM), (0, 0))).astype(compute_dtype)
    b2_p = b2.reshape(1, OUT_DIM).astype(jnp.float32)

    # Advisory cost estimate so XLA can overlap this mem-bound head with neighbours.
    flops = 2 * b_pad * FEAT_PAD * (FEAT_PAD + OUT_DIM)
    bytes_accessed = (x_p.size * x_p.dtype.itemsize
                      + w1_p.size * w1_p.dtype.itemsize
                      + b1_p.size * 4
                      + w2_p.size * w2_p.dtype.itemsize
                      + b2_p.size * 4
                      + b_pad * OUT_DIM * 4)
    cost = pl.CostEstimate(flops=flops, transcendentals=0, bytes_accessed=bytes_accessed)

    out_padded = pl.pallas_call(
        _dann_mlp_kernel,
        out_shape=jax.ShapeDtypeStruct((b_pad, OUT_DIM), jnp.float32),
        grid=(n_tiles,),
        in_specs=[
            pl.BlockSpec((tb, FEAT_PAD), lambda i: (i, 0)),        # x: tiled over batch
            pl.BlockSpec((FEAT_PAD, FEAT_PAD), lambda i: (0, 0)),  # w1: resident
            pl.BlockSpec((1, FEAT_PAD), lambda i: (0, 0)),         # b1: resident
            pl.BlockSpec((FEAT_PAD, OUT_DIM), lambda i: (0, 0)),   # w2: resident
            pl.BlockSpec((1, OUT_DIM), lambda i: (0, 0)),          # b2: resident
        ],
        out_specs=pl.BlockSpec((tb, OUT_DIM), lambda i: (i, 0)),
        compiler_params=pltpu.CompilerParams(
            dimension_semantics=("parallel",),                     # 2 TCs on v7x
        ),
        cost_estimate=cost,
    )(x_p, w1_p, b1_p, w2_p, b2_p)

    return out_padded[:B]


def _reference(x, w1, b1, w2, b2):
    h = jnp.maximum(x @ w1 + b1.reshape(1, -1), 0.0)
    return h @ w2 + b2.reshape(1, -1)


if __name__ == "__main__":
    key = jax.random.PRNGKey(0)
    k_x, k_w1, k_b1, k_w2, k_b2 = jax.random.split(key, 5)

    B = 8  # small batch
    x = jax.random.normal(k_x, (B, IN_DIM), dtype=jnp.float32)

    # Deterministic init mimicking torch Linear's U(-1/sqrt(fan_in), 1/sqrt(fan_in)),
    # stored as (in_features, out_features) so the kernel computes x @ W + b.
    bound1 = 1.0 / jnp.sqrt(jnp.float32(IN_DIM))
    w1 = jax.random.uniform(k_w1, (IN_DIM, HID_DIM), jnp.float32, -bound1, bound1)
    b1 = jax.random.uniform(k_b1, (HID_DIM,), jnp.float32, -bound1, bound1)

    bound2 = 1.0 / jnp.sqrt(jnp.float32(HID_DIM))
    w2 = jax.random.uniform(k_w2, (HID_DIM, OUT_DIM), jnp.float32, -bound2, bound2)
    b2 = jax.random.uniform(k_b2, (OUT_DIM,), jnp.float32, -bound2, bound2)

    out = domain_classifier_dann_home(x, w1, b1, w2, b2)
    out = jax.block_until_ready(out)

    ref = _reference(x, w1, b1, w2, b2)
    assert out.shape == (B, OUT_DIM)
    # bf16 operands with f32 accumulation: relax tolerance vs. the pure-f32 reference.
    assert jnp.allclose(out, ref, atol=3e-2, rtol=3e-2), "mismatch vs JAX reference"

    print("KERNEL_OK")
</pallas_src>

<mosaic_0001>
module attributes {stable_mosaic.version = 11 : i64} {
  func.func @_dann_mlp_kernel(%arg0: i32, %arg1: memref<8x128xbf16, #tpu.memory_space<vmem>>, %arg2: memref<128x128xbf16, #tpu.memory_space<vmem>>, %arg3: memref<1x128xf32, #tpu.memory_space<vmem>>, %arg4: memref<128x2xbf16, #tpu.memory_space<vmem>>, %arg5: memref<1x2xf32, #tpu.memory_space<vmem>>, %arg6: memref<8x2xf32, #tpu.memory_space<vmem>>) attributes {dimension_semantics = [#tpu.dimension_semantics<parallel>], iteration_bounds = array<i64: 1>, scalar_prefetch = 0 : i64, scratch_operands = 0 : i64, tpu.core_type = #tpu.core_type<tc>, window_params = [{transform_indices = @transform_0, window_bounds = array<i64: 8, 128>}, {pipeline_mode = #tpu.pipeline_mode<synchronous>, transform_indices = @transform_1, window_bounds = array<i64: 128, 128>}, {pipeline_mode = #tpu.pipeline_mode<synchronous>, transform_indices = @transform_2, window_bounds = array<i64: 1, 128>}, {pipeline_mode = #tpu.pipeline_mode<synchronous>, transform_indices = @transform_3, window_bounds = array<i64: 128, 2>}, {pipeline_mode = #tpu.pipeline_mode<synchronous>, transform_indices = @transform_4, window_bounds = array<i64: 1, 2>}, {transform_indices = @transform_5, window_bounds = array<i64: 8, 2>}]} {
    %c0 = arith.constant 0 : index
    %c0_0 = arith.constant 0 : index
    %0 = vector.load %arg1[%c0, %c0_0] : memref<8x128xbf16, #tpu.memory_space<vmem>>, vector<8x128xbf16>
    %c0_1 = arith.constant 0 : index
    %c0_2 = arith.constant 0 : index
    %1 = vector.load %arg2[%c0_1, %c0_2] : memref<128x128xbf16, #tpu.memory_space<vmem>>, vector<128x128xbf16>
    %cst = arith.constant dense<0.000000e+00> : vector<8x128xf32>
    %2 = tpu.matmul %0, %1, %cst {dimension_numbers = #tpu.dot_dimension_numbers<[1], [0], [0], [1], [0, 0, 1, 1], [], []>} : vector<8x128xbf16>, vector<128x128xbf16>, vector<8x128xf32> -> vector<8x128xf32>
    %c0_3 = arith.constant 0 : index
    %c0_4 = arith.constant 0 : index
    %3 = vector.load %arg3[%c0_3, %c0_4] : memref<1x128xf32, #tpu.memory_space<vmem>>, vector<1x128xf32>
    %4 = vector.broadcast %3 : vector<1x128xf32> to vector<8x128xf32>
    %5 = arith.addf %2, %4 : vector<8x128xf32>
    %cst_5 = arith.constant 0.000000e+00 : f32
    %6 = vector.broadcast %cst_5 : f32 to vector<8x128xf32>
    %7 = arith.maximumf %5, %6 : vector<8x128xf32>
    %8 = arith.truncf %7 : vector<8x128xf32> to vector<8x128xbf16>
    %c0_6 = arith.constant 0 : index
    %c0_7 = arith.constant 0 : index
    %9 = vector.load %arg4[%c0_6, %c0_7] : memref<128x2xbf16, #tpu.memory_space<vmem>>, vector<128x2xbf16>
    %cst_8 = arith.constant dense<0.000000e+00> : vector<8x2xf32>
    %10 = tpu.matmul %8, %9, %cst_8 {dimension_numbers = #tpu.dot_dimension_numbers<[1], [0], [0], [1], [0, 0, 1, 1], [], []>} : vector<8x128xbf16>, vector<128x2xbf16>, vector<8x2xf32> -> vector<8x2xf32>
    %c0_9 = arith.constant 0 : index
    %c0_10 = arith.constant 0 : index
    %11 = vector.load %arg5[%c0_9, %c0_10] : memref<1x2xf32, #tpu.memory_space<vmem>>, vector<1x2xf32>
    %12 = vector.broadcast %11 : vector<1x2xf32> to vector<8x2xf32>
    %13 = arith.addf %10, %12 : vector<8x2xf32>
    %c0_11 = arith.constant 0 : index
    %c0_12 = arith.constant 0 : index
    %14 = vector.load %arg6[%c0_11, %c0_12] : memref<8x2xf32, #tpu.memory_space<vmem>>, vector<8x2xf32>
    tpu.vector_store %arg6[%c0_11, %c0_12], %13 {strides = array<i32>} : memref<8x2xf32, #tpu.memory_space<vmem>>, vector<8x2xf32>,
    return
  }
  func.func @transform_0(%arg0: i32) -> (i32, i32) {
    %c0_i32 = arith.constant 0 : i32
    %c0_i32_0 = arith.constant 0 : i32
    return %arg0, %c0_i32 : i32, i32
  }
  func.func @transform_1(%arg0: i32) -> (i32, i32) {
    %c0_i32 = arith.constant 0 : i32
    %c0_i32_0 = arith.constant 0 : i32
    %c0_i32_1 = arith.constant 0 : i32
    return %c0_i32, %c0_i32_0 : i32, i32
  }
  func.func @transform_2(%arg0: i32) -> (i32, i32) {
    %c0_i32 = arith.constant 0 : i32
    %c0_i32_0 = arith.constant 0 : i32
    %c0_i32_1 = arith.constant 0 : i32
    return %c0_i32, %c0_i32_0 : i32, i32
  }
  func.func @transform_3(%arg0: i32) -> (i32, i32) {
    %c0_i32 = arith.constant 0 : i32
    %c0_i32_0 = arith.constant 0 : i32
    %c0_i32_1 = arith.constant 0 : i32
    return %c0_i32, %c0_i32_0 : i32, i32
  }
  func.func @transform_4(%arg0: i32) -> (i32, i32) {
    %c0_i32 = arith.constant 0 : i32
    %c0_i32_0 = arith.constant 0 : i32
    %c0_i32_1 = arith.constant 0 : i32
    return %c0_i32, %c0_i32_0 : i32, i32
  }
  func.func @transform_5(%arg0: i32) -> (i32, i32) {
    %c0_i32 = arith.constant 0 : i32
    %c0_i32_0 = arith.constant 0 : i32
    return %arg0, %c0_i32 : i32, i32
  }
}

</mosaic_0001>

<bundles_post_ra>
// kernel: tpu_custom_call.1
= control target key start
LH: loop header
LB: loop body
LE: loop exit
PB: predicated region body
PF: predicated region fallthrough
CT: control target
= control target key end

     0   :  { %10 = vsyncpa [#allocation3], 0  ;;  %s315_s21 = smov [#allocation2]   ;;  %s406_s0 = inlined_call_operand.hbm [shape: bf16[8,128], index: 0, kind: input, shape index: {}]   ;;  %s407_s1 = inlined_call_operand.vmem [shape: bf16[128,128], index: 1, kind: input, shape index: {}]   ;;  %s408_s2 = inlined_call_operand.vmem [shape: f32[1,128], index: 2, kind: input, shape index: {}]   ;;  %s409_s3 = inlined_call_operand.vmem [shape: bf16[128,2], index: 3, kind: input, shape index: {}]   ;;  %s410_s4 = inlined_call_operand.vmem [shape: f32[1,2], index: 4, kind: input, shape index: {}]   ;;  %s411_s5 = inlined_call_operand.vmem [shape: f32[8,2], index: 5, kind: output, shape index: {}]  }
   0x1   :  { %s16_s20 = sshll.u32 %s406_s0, 4  ;;  %s18_s22 = sshll.u32 %s315_s21, 4  ;;  %s17_s20 = int_to_ptr.hbm [resolvable:$true] %s16_s20  ;;  %s19_s22 = int_to_ptr.vmem [resolvable:$true] %s18_s22 }
   0x2   :  { %21 = dma.hbm_to_vmem [thread:$0]  %s17_s20, 64, %s19_s22, [#allocation3]  }
   0x3   :  { %313 = dma.done.wait [#allocation3], 64  }
   0x4   :  { %314 = vsyncadd [#allocation3], 4294967232  ;;  %v277_v0 = vld [vmem:[%s407_s1 + $0x38] sm:$0xff]  ;;  %v276_v1 = vld [vmem:[%s407_s1 + $0x30] sm:$0xff]  ;;  %vm199_vm0 = vcmask 15360  }
   0x5   :  { %103 = vmatpush.bf16.msra.mxu0 %v277_v0  ;;  %v285_v2 = vld [vmem:[%s409_s3 + $0x38] sm:$0xff]  ;;  %v284_v3 = vld [vmem:[%s409_s3 + $0x30] sm:$0xff]  ;;  %v275_v4 = vld [vmem:[%s407_s1 + $0x28] sm:$0xff] }
   0x6   :  { %186 = vmatpush.bf16.msra.mxu1 %v285_v2  ;;  %v283_v5 = vld [vmem:[%s409_s3 + $0x28] sm:$0xff]  ;;  %v274_v6 = vld [vmem:[%s407_s1 + $0x20] sm:$0xff]  ;;  %v273_v8 = vld [vmem:[%s407_s1 + $0x18] sm:$0xff] }
   0x7   :  { %v282_v7 = vld [vmem:[%s409_s3 + $0x20] sm:$0xff]  ;;  %v281_v9 = vld [vmem:[%s409_s3 + $0x18] sm:$0xff]  ;;  %v272_v10 = vld [vmem:[%s407_s1 + $0x10] sm:$0xff] }
   0x8   :  { %v280_v11 = vld [vmem:[%s409_s3 + $0x10] sm:$0xff]  ;;  %v271_v12 = vld [vmem:[%s407_s1 + $0x8] sm:$0xff]  ;;  %v270_v13 = vld [vmem:[%s407_s1] sm:$0xff] }
   0x9   :  { %104 = vmatpush.bf16.msra.mxu0 %v276_v1  ;;  %v34_v14 = vld [vmem:[#allocation2] sm:$0xf]  ;;  %v279_v15 = vld [vmem:[%s409_s3 + $0x8] sm:$0xff] }
   0xa   :  { %187 = vmatpush.bf16.msra.mxu1 %v284_v3  ;;  %v278_v16 = vld [vmem:[%s409_s3] sm:$0xff] }
   0xb   :  { %v287_v17 = vld [vmem:[%s408_s2] ss:$0 sm:$0xff] }
   0xc   :  { %v288_v23 = vld [vmem:[%s410_s4] ss:$0 sm:$0xff] }
   0xd   :  { %105 = vmatpush.bf16.msra.mxu0 %v275_v4 }
   0xe   :  { %188 = vmatpush.bf16.msra.mxu1 %v283_v5 }
  0x11   :  { %106 = vmatpush.bf16.msra.mxu0 %v274_v6 }
  0x12   :  { %189 = vmatpush.bf16.msra.mxu1 %v282_v7 }
  0x15   :  { %107 = vmatpush.bf16.msra.mxu0 %v273_v8 }
  0x16   :  { %190 = vmatpush.bf16.msra.mxu1 %v281_v9 }
  0x19   :  { %108 = vmatpush.bf16.msra.mxu0 %v272_v10 }
  0x1a   :  { %191 = vmatpush.bf16.msra.mxu1 %v280_v11 }
  0x1d   :  { %109 = vmatpush.bf16.msra.mxu0 %v271_v12 }
  0x1e   :  { %192 = vmatpush.bf16.msra.mxu1 %v279_v15 }
  0x21   :  { %110 = vmatpush.bf16.msra.mxu0 %v270_v13 }
  0x22   :  { %193 = vmatpush.bf16.msra.mxu1 %v278_v16 }
  0x24   :  { %111 = vmatmul.bf16.vlgmr.msra.gmra.mxu0 %v34_v14 }
  0xa1   :  { %v112_v18 = vpop.f32.mrf.mxu0 }
  0xa2   :  { %v113_v19 = vadd.f32 %v287_v17, %v112_v18 }
  0xa4   :  { %v116_v20 = vmax.f32 %v113_v19, 0.0 }
  0xa6   :  { %v117_v21 = vpack.c.bf16 %v116_v20, %v116_v20 }
  0xa8   :  { %194 = vmatmul.bf16.vlgmr.msra.gmra.mxu1 %v117_v21 }
  0xa9   :  { %v114_v22 = vpop.f32.mrf.mxu0 }
 0x125   :  { %v195_v24 = vpop.f32.mrf.mxu1 }
 0x126   :  { %v196_v25 = vadd.f32 %v288_v23, %v195_v24 }
 0x128   :  { %200 = vst.msk [vmem:[%s411_s5] sm:$0xff] %vm199_vm0, %v196_v25 }
 0x12d   :  { %v197_v26 = vpop.f32.mrf.mxu1 }
 0x12e   :  { %205 = vsyncpa [#allocation3], 1 }

</bundles_post_ra>
